<compile_context>
chip_gen: v6e
topology: v6e:2x2x1
jax: 0.10.0
libtpu: 0.0.40
codegen_flags: <defaults>
</compile_context>

<pallas_src>
import functools
import math

import jax
import jax.numpy as jnp
from jax.experimental import pallas as pl
from jax.experimental.pallas import tpu as pltpu

_INV_SQRT2 = 0.7071067811865476


# ----------------------------------------------------------------------------
# Exact GELU (erf-based, matching nn.GELU() default approximate='none').
# Phi(x) = 0.5*(1 + erf(x/sqrt(2))) via Abramowitz & Stegun 7.1.26 on |x|,
# branchless (single select).  The divide uses the EUP approximate reciprocal.
# ----------------------------------------------------------------------------
def _gelu_exact(x):
    z = jnp.abs(x) * _INV_SQRT2
    t = pl.reciprocal(1.0 + 0.3275911 * z, approx=True)
    poly = ((((1.061405429 * t - 1.453152027) * t + 1.421413741) * t
             - 0.284496736) * t + 0.254829592) * t
    q = 0.5 * poly * jnp.exp(-z * z)          # = 0.5*(1 - erf(z)) for z >= 0
    phi = jnp.where(x >= 0.0, 1.0 - q, q)     # = 0.5*(1 + erf(x/sqrt(2)))
    return x * phi


# ----------------------------------------------------------------------------
# Pallas kernel
# ----------------------------------------------------------------------------
def _se_kernel(x_ref, w_ref, gb_ref, out_ref, *, seg_len, kernel_size):
    # x_ref  : (C_in, N*L)    input, lane-dense, lanes batch-major (also residual)
    # w_ref  : (C_out, K*C_in) conv weight, flattened tap-major
    # gb_ref : (C_out, 2)      packed [gamma, beta]
    # out_ref: (C_out, N*L)
    C_in, NL = x_ref.shape
    K = kernel_size
    pad = K // 2
    L = seg_len

    x = x_ref[...].astype(jnp.float32)          # (C_in, NL)
    w = w_ref[...].astype(jnp.float32)          # (C_out, K*C_in)

    # Position within each length-L batch segment along the lane axis (computed once).
    lane = jax.lax.broadcasted_iota(jnp.int32, (C_in, NL), 1)
    lib = jax.lax.rem(lane, L)

    # --- Conv1d (stride=1, 'same' padding): ONE im2col matmul. Tap k reads
    #     x[:, p + (k - pad)] within its own batch segment: a global lane roll
    #     plus a per-segment boundary mask (also kills cross-batch leakage). ---
    rows = []
    for k in range(K):
        d = k - pad
        if d == 0:
            rows.append(x)
        else:
            xs = pltpu.roll(x, shift=(-d) % NL, axis=1)       # xs[:, p] = x[:, p + d]
            valid = jnp.logical_and(lib >= -d, lib < L - d)
            rows.append(jnp.where(valid, xs, 0.0))
    patch = jnp.concatenate(rows, axis=0)        # (K*C_in, NL)

    conv = jnp.dot(w, patch, preferred_element_type=jnp.float32)   # (C_out, NL)

    # --- BatchNorm1d (train mode: biased batch stats over N and L) per channel:
    #     a single lane-axis reduce; two-pass variance for robustness. The conv
    #     bias would cancel here, so it was never added. ---
    m = jnp.mean(conv, axis=1, keepdims=True)                  # (C_out, 1)
    c = conv - m
    var = jnp.mean(c * c, axis=1, keepdims=True)               # (C_out, 1)
    gamma = gb_ref[:, 0:1].astype(jnp.float32)                 # (C_out, 1)
    beta = gb_ref[:, 1:2].astype(jnp.float32)                  # (C_out, 1)
    scale = gamma * jax.lax.rsqrt(var + 1e-5)                  # (C_out, 1)

    # --- BN FMA + residual add + exact GELU in one elementwise pass. ---
    pre = c * scale + beta + x
    out_ref[...] = _gelu_exact(pre).astype(out_ref.dtype)


# ----------------------------------------------------------------------------
# Wrapper
# ----------------------------------------------------------------------------
def se_submodule(x, w, b, gamma, beta, *, kernel_size):
    """x: (N, C, L); w: (C_out, C_in, K); b/gamma/beta: (C_out,)."""
    del b  # cancelled exactly by train-mode BatchNorm mean subtraction
    N, C_in, L = x.shape
    C_out = w.shape[0]
    assert C_out == C_in, "residual add requires in_channel == out_channel"

    # Flatten weight tap-major so row k*C_in + ci multiplies the tap-k shifted x.
    w_flat = jnp.transpose(w, (0, 2, 1)).reshape(C_out, kernel_size * C_in)
    # Pack gamma/beta into one (C_out, 2) tile.
    gb = jnp.stack([gamma, beta], axis=1).astype(jnp.float32)
    # Lane-dense input slab: (C_in, N*L), lanes batch-major (p = n*L + l).
    x2 = jnp.transpose(x, (1, 0, 2)).reshape(C_in, N * L)

    vmem = pl.BlockSpec(memory_space=pltpu.MemorySpace.VMEM)
    out2 = pl.pallas_call(
        functools.partial(_se_kernel, seg_len=L, kernel_size=kernel_size),
        out_shape=jax.ShapeDtypeStruct((C_out, N * L), x.dtype),
        in_specs=[vmem, vmem, vmem],
        out_specs=vmem,
    )(x2, w_flat, gb)

    # Back to NCL (XLA-side layout plumbing).
    return jnp.transpose(out2.reshape(C_out, N, L), (1, 0, 2))


# ----------------------------------------------------------------------------
# Pure-JAX reference (full module semantics, including the conv bias)
# ----------------------------------------------------------------------------
def se_submodule_ref(x, w, b, gamma, beta, *, kernel_size):
    pad = kernel_size // 2
    conv = jax.lax.conv_general_dilated(
        x, w, window_strides=(1,), padding=[(pad, pad)],
        dimension_numbers=("NCH", "OIH", "NCH"))
    conv = conv + b[None, :, None]
    mean = jnp.mean(conv, axis=(0, 2), keepdims=True)
    var = jnp.mean(jnp.square(conv - mean), axis=(0, 2), keepdims=True)
    bn = (conv - mean) * jax.lax.rsqrt(var + 1e-5)
    bn = bn * gamma[None, :, None] + beta[None, :, None]
    return jax.nn.gelu(bn + x, approximate=False)


if __name__ == "__main__":
    # Small shapes consistent with the module: residual requires in_ch == out_ch.
    N, C, L, K = 2, 8, 128, 3

    key = jax.random.PRNGKey(0)
    kx, kw, kb, kg, kbt = jax.random.split(key, 5)
    x = jax.random.normal(kx, (N, C, L), dtype=jnp.float32)
    w = jax.random.normal(kw, (C, C, K), dtype=jnp.float32) * (1.0 / math.sqrt(C * K))
    b = jax.random.normal(kb, (C,), dtype=jnp.float32) * 0.1
    gamma = 1.0 + 0.1 * jax.random.normal(kg, (C,), dtype=jnp.float32)
    beta = 0.1 * jax.random.normal(kbt, (C,), dtype=jnp.float32)

    out = jax.block_until_ready(se_submodule(x, w, b, gamma, beta, kernel_size=K))

    ref = se_submodule_ref(x, w, b, gamma, beta, kernel_size=K)
    assert out.shape == (N, C, L)
    assert jnp.allclose(out, ref, atol=2e-3, rtol=2e-3), "mismatch vs reference"

    print("KERNEL_OK")
</pallas_src>

<mosaic_0001>
module attributes {stable_mosaic.version = 11 : i64} {
  func.func @_se_kernel(%arg0: memref<8x256xf32, #tpu.memory_space<vmem>>, %arg1: memref<8x24xf32, #tpu.memory_space<vmem>>, %arg2: memref<8x2xf32, #tpu.memory_space<vmem>>, %arg3: memref<8x256xf32, #tpu.memory_space<vmem>>) attributes {dimension_semantics = [], scalar_prefetch = 0 : i64, scratch_operands = 0 : i64, tpu.core_type = #tpu.core_type<tc>} {
    %c0 = arith.constant 0 : index
    %c0_0 = arith.constant 0 : index
    %0 = vector.load %arg0[%c0, %c0_0] : memref<8x256xf32, #tpu.memory_space<vmem>>, vector<8x256xf32>
    %c0_1 = arith.constant 0 : index
    %c0_2 = arith.constant 0 : index
    %1 = vector.load %arg1[%c0_1, %c0_2] : memref<8x24xf32, #tpu.memory_space<vmem>>, vector<8x24xf32>
    %2 = tpu.iota {dimensions = array<i32: 1>} : vector<8x256xi32>
    %c128_i32 = arith.constant 128 : i32
    %3 = vector.broadcast %c128_i32 : i32 to vector<8x256xi32>
    %4 = arith.remsi %2, %3 : vector<8x256xi32>
    %c1_i32 = arith.constant 1 : i32
    %5 = tpu.dynamic_rotate %0 by %c1_i32 dim 1 : vector<8x256xf32>, i32 -> vector<8x256xf32>
    %c1_i32_3 = arith.constant 1 : i32
    %6 = vector.broadcast %c1_i32_3 : i32 to vector<8x256xi32>
    %7 = arith.cmpi sge, %4, %6 : vector<8x256xi32>
    %c129_i32 = arith.constant 129 : i32
    %8 = vector.broadcast %c129_i32 : i32 to vector<8x256xi32>
    %9 = arith.cmpi slt, %4, %8 : vector<8x256xi32>
    %10 = arith.andi %7, %9 : vector<8x256xi1>
    %cst = arith.constant 0.000000e+00 : f32
    %11 = vector.broadcast %cst : f32 to vector<8x256xf32>
    %12 = arith.select %10, %5, %11 : vector<8x256xi1>, vector<8x256xf32>
    %c255_i32 = arith.constant 255 : i32
    %13 = tpu.dynamic_rotate %0 by %c255_i32 dim 1 : vector<8x256xf32>, i32 -> vector<8x256xf32>
    %c-1_i32 = arith.constant -1 : i32
    %14 = vector.broadcast %c-1_i32 : i32 to vector<8x256xi32>
    %15 = arith.cmpi sge, %4, %14 : vector<8x256xi32>
    %c127_i32 = arith.constant 127 : i32
    %16 = vector.broadcast %c127_i32 : i32 to vector<8x256xi32>
    %17 = arith.cmpi slt, %4, %16 : vector<8x256xi32>
    %18 = arith.andi %15, %17 : vector<8x256xi1>
    %cst_4 = arith.constant 0.000000e+00 : f32
    %19 = vector.broadcast %cst_4 : f32 to vector<8x256xf32>
    %20 = arith.select %18, %13, %19 : vector<8x256xi1>, vector<8x256xf32>
    %21 = tpu.concatenate %12, %0, %20 in 0 : vector<8x256xf32>, vector<8x256xf32>, vector<8x256xf32> -> vector<24x256xf32>
    %cst_5 = arith.constant dense<0.000000e+00> : vector<8x256xf32>
    %22 = tpu.matmul %1, %21, %cst_5 {dimension_numbers = #tpu.dot_dimension_numbers<[1], [0], [0], [1], [0, 0, 1, 1], [], []>} : vector<8x24xf32>, vector<24x256xf32>, vector<8x256xf32> -> vector<8x256xf32>
    %cst_6 = arith.constant dense<0.000000e+00> : vector<8xf32>
    %23 = vector.multi_reduction <add>, %22, %cst_6 [1] : vector<8x256xf32> to vector<8xf32>
    %24 = vector.shape_cast %23 : vector<8xf32> to vector<8x1xf32>
    %cst_7 = arith.constant 2.560000e+02 : f32
    %25 = vector.broadcast %cst_7 : f32 to vector<8x1xf32>
    %26 = arith.divf %24, %25 : vector<8x1xf32>
    %27 = vector.broadcast %26 : vector<8x1xf32> to vector<8x256xf32>
    %28 = arith.subf %22, %27 : vector<8x256xf32>
    %29 = arith.mulf %28, %28 : vector<8x256xf32>
    %cst_8 = arith.constant dense<0.000000e+00> : vector<8xf32>
    %30 = vector.multi_reduction <add>, %29, %cst_8 [1] : vector<8x256xf32> to vector<8xf32>
    %31 = vector.shape_cast %30 : vector<8xf32> to vector<8x1xf32>
    %cst_9 = arith.constant 2.560000e+02 : f32
    %32 = vector.broadcast %cst_9 : f32 to vector<8x1xf32>
    %33 = arith.divf %31, %32 : vector<8x1xf32>
    %c0_10 = arith.constant 0 : index
    %c0_11 = arith.constant 0 : index
    %34 = vector.load %arg2[%c0_10, %c0_11] : memref<8x2xf32, #tpu.memory_space<vmem>>, vector<8x1xf32>
    %c0_12 = arith.constant 0 : index
    %c1 = arith.constant 1 : index
    %35 = vector.load %arg2[%c0_12, %c1] : memref<8x2xf32, #tpu.memory_space<vmem>>, vector<8x1xf32>
    %cst_13 = arith.constant 9.99999974E-6 : f32
    %36 = vector.broadcast %cst_13 : f32 to vector<8x1xf32>
    %37 = arith.addf %33, %36 : vector<8x1xf32>
    %38 = math.rsqrt %37 : vector<8x1xf32>
    %39 = arith.mulf %34, %38 : vector<8x1xf32>
    %40 = vector.broadcast %39 : vector<8x1xf32> to vector<8x256xf32>
    %41 = arith.mulf %28, %40 : vector<8x256xf32>
    %42 = vector.broadcast %35 : vector<8x1xf32> to vector<8x256xf32>
    %43 = arith.addf %41, %42 : vector<8x256xf32>
    %44 = arith.addf %43, %0 : vector<8x256xf32>
    %45 = math.absf %44 : vector<8x256xf32>
    %cst_14 = arith.constant 0.707106769 : f32
    %46 = vector.broadcast %cst_14 : f32 to vector<8x256xf32>
    %47 = arith.mulf %45, %46 : vector<8x256xf32>
    %cst_15 = arith.constant 0.327591091 : f32
    %48 = vector.broadcast %cst_15 : f32 to vector<8x256xf32>
    %49 = arith.mulf %48, %47 : vector<8x256xf32>
    %cst_16 = arith.constant 1.000000e+00 : f32
    %50 = vector.broadcast %cst_16 : f32 to vector<8x256xf32>
    %51 = arith.addf %50, %49 : vector<8x256xf32>
    %52 = tpu.reciprocal %51 {approx = true} : vector<8x256xf32> -> vector<8x256xf32>
    %cst_17 = arith.constant 1.06140542 : f32
    %53 = vector.broadcast %cst_17 : f32 to vector<8x256xf32>
    %54 = arith.mulf %53, %52 : vector<8x256xf32>
    %cst_18 = arith.constant 1.45315206 : f32
    %55 = vector.broadcast %cst_18 : f32 to vector<8x256xf32>
    %56 = arith.subf %54, %55 : vector<8x256xf32>
    %57 = arith.mulf %56, %52 : vector<8x256xf32>
    %cst_19 = arith.constant 1.42141378 : f32
    %58 = vector.broadcast %cst_19 : f32 to vector<8x256xf32>
    %59 = arith.addf %57, %58 : vector<8x256xf32>
    %60 = arith.mulf %59, %52 : vector<8x256xf32>
    %cst_20 = arith.constant 0.284496725 : f32
    %61 = vector.broadcast %cst_20 : f32 to vector<8x256xf32>
    %62 = arith.subf %60, %61 : vector<8x256xf32>
    %63 = arith.mulf %62, %52 : vector<8x256xf32>
    %cst_21 = arith.constant 0.254829586 : f32
    %64 = vector.broadcast %cst_21 : f32 to vector<8x256xf32>
    %65 = arith.addf %63, %64 : vector<8x256xf32>
    %66 = arith.mulf %65, %52 : vector<8x256xf32>
    %cst_22 = arith.constant 5.000000e-01 : f32
    %67 = vector.broadcast %cst_22 : f32 to vector<8x256xf32>
    %68 = arith.mulf %67, %66 : vector<8x256xf32>
    %cst_23 = arith.constant 0.000000e+00 : f32
    %69 = vector.broadcast %cst_23 : f32 to vector<8x256xf32>
    %70 = arith.subf %69, %47 : vector<8x256xf32>
    %71 = arith.mulf %70, %47 : vector<8x256xf32>
    %72 = math.exp %71 : vector<8x256xf32>
    %73 = arith.mulf %68, %72 : vector<8x256xf32>
    %cst_24 = arith.constant 0.000000e+00 : f32
    %74 = vector.broadcast %cst_24 : f32 to vector<8x256xf32>
    %75 = arith.cmpf oge, %44, %74 : vector<8x256xf32>
    %cst_25 = arith.constant 1.000000e+00 : f32
    %76 = vector.broadcast %cst_25 : f32 to vector<8x256xf32>
    %77 = arith.subf %76, %73 : vector<8x256xf32>
    %78 = arith.select %75, %77, %73 : vector<8x256xi1>, vector<8x256xf32>
    %79 = arith.mulf %44, %78 : vector<8x256xf32>
    %c0_26 = arith.constant 0 : index
    %c0_27 = arith.constant 0 : index
    %80 = vector.load %arg3[%c0_26, %c0_27] : memref<8x256xf32, #tpu.memory_space<vmem>>, vector<8x256xf32>
    tpu.vector_store %arg3[%c0_26, %c0_27], %79 {strides = array<i32>} : memref<8x256xf32, #tpu.memory_space<vmem>>, vector<8x256xf32>,
    return
  }
}

</mosaic_0001>

<bundles_post_ra>
// kernel: tpu_custom_call.1
= control target key start
LH: loop header
LB: loop body
LE: loop exit
PB: predicated region body
PF: predicated region fallthrough
CT: control target
= control target key end

     0   :  { %8 = vsyncpa [#allocation3], 0  ;;  %s368_s0 = inlined_call_operand.hbm [shape: f32[8,256], index: 0, kind: input, shape index: {}]   ;;  %s369_s1 = inlined_call_operand.vmem [shape: f32[8,24], index: 1, kind: input, shape index: {}]   ;;  %s370_s2 = inlined_call_operand.vmem [shape: f32[8,2], index: 2, kind: input, shape index: {}]   ;;  %s371_s3 = inlined_call_operand.hbm [shape: f32[8,256], index: 3, kind: output, shape index: {}]  }
   0x1   :  { %9 = vsyncpa [#allocation4], 0  ;;  %s323_s12 = smov [#allocation2]  }
   0x2   :  { %s16_s13 = sshll.u32 %s323_s12, 4  ;;  %s17_s13 = int_to_ptr.vmem [resolvable:$true] %s16_s13 }
   0x3   :  { %s287_s14 = scalar_lea.vmem %s17_s13, 256  ;;  %p292_p1 = scmp.lt.s32.totalorder %s17_s13, %s17_s13 }
   0x4   :  { %p288_p0 = scmp.ne.s32.totalorder %s17_s13, %s287_s14  ;;  %p293_p2 = scmp.lt.s32.totalorder %s287_s14, %s287_s14 }
   0x6   :  { %p294_p3 = por %p293_p2, %p292_p1 }
   0x8   :  { %p295_p4 = pnand %p294_p3, %p288_p0 }
   0xa   :  { %298 = shalt.err (!%p295_p4)
}
   0xb   :  { %19 = dma.hbm_to_vmem [thread:$0]  %s368_s0, 256, %s17_s13, [#allocation3]  }
   0xc   :  { %319 = dma.done.wait [#allocation3], 256  }
   0xd   :  { %320 = vsyncadd [#allocation3], 4294967040  ;;  %v324_v0 = vmov 0.0   ;;  %v353_v1 = vld [vmem:[#allocation2] sm:$0xff]  ;;  %s325_s17 = smov 1   ;;  %s326_s18 = smov 127   ;;  %v30_v3 = vlaneseq }
   0xe   :  { %145 = vmatprep.mubr.f32.mxu0 %v324_v0  ;;  %47 = vrot.lane.b32.xlu1 %v353_v1, %s325_s17  ;;  %v28_v2 = vld [vmem:[#allocation2 + $0x8] sm:$0xff]  ;;  %v29_v14 = vld [vmem:[%s369_s1] sm:$0xff]  ;;  %vm77_vm5 = vcmask 195584   ;;  %v327_v26 = vmov 0   ;;  %v328_v28 = vmov 1  }
   0xf   :  { %62 = vrot.lane.b32.xlu0 %v353_v1, %s326_s18  ;;  %v31_v4 = vand.u32 127, %v30_v3  ;;  %v165_v27 = vld [vmem:[%s370_s2] sm:$0xff]  ;;  %267 = vset.pattern.permute.xlu1 %v328_v28  ;;  %s329_s2 = smov [#allocation5]  }
  0x10   :  { %266 = vset.pattern.permute.xlu0 %v327_v26  ;;  %s241_s21 = sshll.u32 %s329_s2, 4  ;;  %s242_s21 = int_to_ptr.vmem [resolvable:$true] %s241_s21 }
  0x11   :  { %v32_v5 = vadd.s32 128, %v31_v4  ;;  %vm66_vm0 = vcmp.lt.s32.totalorder %v31_v4, 127  ;;  %vm51_vm2 = vcmp.lt.s32.totalorder %v31_v4, 1  ;;  %vm54_vm4 = vcmp.ge.s32.totalorder %v31_v4, 1  ;;  %s299_s22 = scalar_lea.vmem %s242_s21, 256  ;;  %p304_p6 = scmp.lt.s32.totalorder %s242_s21, %s242_s21 }
  0x12   :  { %49 = vrot.lane.b32.xlu1 %v28_v2, %s325_s17  ;;  %p300_p5 = scmp.ne.s32.totalorder %s242_s21, %s299_s22  ;;  %p305_p7 = scmp.lt.s32.totalorder %s299_s22, %s299_s22 }
  0x13   :  { %64 = vrot.lane.b32.xlu0 %v28_v2, %s326_s18  ;;  %v44_v6 = vand.u32 127, %v32_v5 }
  0x14   :  { %p306_p8 = por %p305_p7, %p304_p6 }
  0x15   :  { %vm72_vm1 = vcmp.lt.s32.totalorder %v44_v6, 127  ;;  %vm55_vm3 = vcmp.ge.s32.totalorder %v44_v6, 1 }
  0x16   :  { %p307_p9 = pnand %p306_p8, %p300_p5 }
  0x80   :  { %v48_v7 = vpop.permute.xlu1 %47 }
  0x81   :  { %v63_v8 = vpop.permute.xlu0 %62 }
  0x84   :  { %v50_v12 = vpop.permute.xlu1 %49 }
  0x85   :  { %v65_v9 = vpop.permute.xlu0 %64  ;;  %v52_v13 = vsel %vm51_vm2, %v48_v7, %v50_v12  ;;  %v53_v15 = vsel %vm51_vm2, %v50_v12, %v48_v7 }
  0x86   :  { %v68_v10 = vsel %vm66_vm0, %v65_v9, %v63_v8  ;;  %v67_v11 = vsel %vm66_vm0, %v63_v8, %v65_v9 }
  0x87   :  { %250 = vmatprep.subr.msk.mxu0 %vm72_vm1, %v68_v10 }
  0x88   :  { %251 = vmatpush1.msk.msra.mxu0 %vm66_vm0, %v67_v11 }
  0x89   :  { %109 = vmatprep.subr.mxu0 %v28_v2 }
  0x8a   :  { %110 = vmatpush1.msra.mxu0 %v353_v1 }
  0x8b   :  { %252 = vmatprep.subr.msk.mxu0 %vm55_vm3, %v52_v13 }
  0x8c   :  { %253 = vmatpush1.msk.msra.mxu0 %vm54_vm4, %v53_v15 }
  0x8d   :  { %254 = vmatmul.mubr.msk.f32.vlgmr.msra.gmra.mxu0 %vm77_vm5, %v29_v14 }
 0x14d   :  { %v147_v16 = vpop.f32.mrf.mxu0 }
 0x14f   :  { %v149_v17 = vpop.f32.mrf.mxu0 }
 0x150   :  { %v152_v18 = vadd.f32 %v149_v17, %v147_v16 }
 0x152   :  { %153 = vadd.xlane.f32.xlu0 %v152_v18 }
 0x1db   :  { %v154_v19 = vpop.xlane.xlu0 %153 }
 0x1dc   :  { %v156_v20 = vmul.f32 0.00390625, %v154_v19 }
 0x1de   :  { %v157_v21 = vsub.f32 %v147_v16, %v156_v20  ;;  %v158_v22 = vsub.f32 %v149_v17, %v156_v20 }
 0x1e0   :  { %v159_v23 = vmul.f32 %v157_v21, %v157_v21  ;;  %v160_v24 = vmul.f32 %v158_v22, %v158_v22 }
 0x1e2   :  { %v161_v25 = vadd.f32 %v160_v24, %v159_v23 }
 0x1e4   :  { %162 = vadd.xlane.f32.xlu1 %v161_v25 }
 0x1f5   :  { %178 = vperm.xlu1 %267, %v165_v27  }
 0x26d   :  { %v163_v29 = vpop.xlane.xlu1 %162 }
 0x26e   :  { %v164_v30 = vmul.f32 0.00390625, %v163_v29 }
 0x270   :  { %v166_v31 = vadd.f32 1e-05, %v164_v30 }
 0x271   :  { %v179_v35 = vpop.permute.xlu1 %178 }
 0x272   :  { %269 = vrsqrt.f32 %v166_v31 }
 0x27f   :  { %v270_v32 = vpop.eup %269 }
 0x280   :  { %v168_v33 = vmul.f32 %v270_v32, %v165_v27 }
 0x282   :  { %171 = vperm.xlu0 %266, %v168_v33  }
 0x286   :  { %268 = vset.pattern.permute.xlu0 %v328_v28 }
 0x2fd   :  { %v172_v34 = vpop.permute.xlu0 %171 }
 0x2fe   :  { %v174_v36 = vmul.f32 %v172_v34, %v157_v21  ;;  %v175_v37 = vmul.f32 %v172_v34, %v158_v22 }
 0x300   :  { %v181_v38 = vadd.f32 %v179_v35, %v174_v36  ;;  %v182_v39 = vadd.f32 %v179_v35, %v175_v37 }
 0x302   :  { %v183_v40 = vadd.f32 %v181_v38, %v353_v1  ;;  %v184_v41 = vadd.f32 %v182_v39, %v28_v2 }
 0x304   :  { %v185_v42 = vand.u32 2147483647, %v183_v40  ;;  %v186_v43 = vand.u32 2147483647, %v184_v41  ;;  %vm225_vm6 = vcmp.ge.f32.partialorder %v183_v40, 0.0  ;;  %vm226_vm7 = vcmp.ge.f32.partialorder %v184_v41, 0.0 }
 0x306   :  { %v187_v44 = vmul.f32 0.70710677, %v185_v42  ;;  %v188_v45 = vmul.f32 0.70710677, %v186_v43 }
 0x308   :  { %v189_v46 = vmul.f32 0.3275911, %v187_v44  ;;  %v190_v47 = vmul.f32 0.3275911, %v188_v45  ;;  %v215_v50 = vsub.f32 0.0, %v187_v44  ;;  %v216_v51 = vsub.f32 0.0, %v188_v45 }
 0x30a   :  { %v191_v48 = vadd.f32 1.0, %v189_v46  ;;  %v192_v49 = vadd.f32 1.0, %v190_v47  ;;  %v217_v52 = vmul.f32 %v215_v50, %v187_v44  ;;  %v218_v54 = vmul.f32 %v216_v51, %v188_v45 }
 0x30c   :  { %271 = vrcp.f32 %v191_v48  ;;  %v219_v58 = vmul.f32 1.442695, %v217_v52  ;;  %v221_v60 = vmul.f32 1.442695, %v218_v54 }
 0x30d   :  { %273 = vrcp.f32 %v192_v49 }
 0x30e   :  { %275 = vpow2.f32 %v219_v58 }
 0x30f   :  { %277 = vpow2.f32 %v221_v60 }
 0x319   :  { %v272_v53 = vpop.eup %271 }
 0x31a   :  { %v274_v55 = vpop.eup %273  ;;  %v195_v56 = vmul.f32 1.0614054, %v272_v53 }
 0x31b   :  { %v196_v57 = vmul.f32 1.0614054, %v274_v55  ;;  %v276_v13 = vpop.eup %275 }
 0x31c   :  { %v255_v59 = vadd.f32 -1.4531521, %v195_v56  ;;  %v278_v15 = vpop.eup %277 }
 0x31d   :  { %v256_v61 = vadd.f32 -1.4531521, %v196_v57 }
 0x31e   :  { %v199_v62 = vmul.f32 %v272_v53, %v255_v59 }
 0x31f   :  { %v200_v63 = vmul.f32 %v274_v55, %v256_v61 }
 0x320   :  { %v201_v0 = vadd.f32 1.4214138, %v199_v62 }
 0x321   :  { %v202_v1 = vadd.f32 1.4214138, %v200_v63 }
 0x322   :  { %v203_v2 = vmul.f32 %v272_v53, %v201_v0 }
 0x323   :  { %v204_v3 = vmul.f32 %v274_v55, %v202_v1 }
 0x324   :  { %v257_v4 = vadd.f32 -0.28449672, %v203_v2 }
 0x325   :  { %v258_v5 = vadd.f32 -0.28449672, %v204_v3 }
 0x326   :  { %v207_v6 = vmul.f32 %v272_v53, %v257_v4 }
 0x327   :  { %v208_v7 = vmul.f32 %v274_v55, %v258_v5 }
 0x328   :  { %v209_v8 = vadd.f32 0.2548296, %v207_v6 }
 0x329   :  { %v210_v9 = vadd.f32 0.2548296, %v208_v7 }
 0x32a   :  { %v211_v10 = vmul.f32 %v272_v53, %v209_v8 }
 0x32b   :  { %v212_v11 = vmul.f32 %v274_v55, %v210_v9 }
 0x32c   :  { %v213_v12 = vmul.f32 0.5, %v211_v10 }
 0x32d   :  { %v214_v14 = vmul.f32 0.5, %v212_v11 }
 0x32e   :  { %v223_v16 = vmul.f32 %v276_v13, %v213_v12 }
 0x32f   :  { %v224_v17 = vmul.f32 %v278_v15, %v214_v14 }
 0x330   :  { %v227_v18 = vsub.f32 1.0, %v223_v16 }
 0x331   :  { %v228_v19 = vsub.f32 1.0, %v224_v17 }
 0x332   :  { %v229_v20 = vsel %vm225_vm6, %v227_v18, %v223_v16 }
 0x333   :  { %v230_v21 = vsel %vm226_vm7, %v228_v19, %v224_v17  ;;  %v231_v22 = vmul.f32 %v229_v20, %v183_v40 }
 0x334   :  { %v232_v23 = vmul.f32 %v230_v21, %v184_v41 }
 0x335   :  { %233 = vst [vmem:[#allocation5] sm:$0xff] %v231_v22 }
 0x336   :  { %234 = vst [vmem:[#allocation5 + $0x8] sm:$0xff] %v232_v23 }
 0x337   :  { %310 = shalt.err (!%p307_p9)
}
 0x338   :  { %244 = dma.vmem_to_hbm [thread:$0]  %s242_s21, 256, %s371_s3, [#allocation4]  }
 0x339   :  { %321 = dma.done.wait [#allocation4], 256  }
 0x33a   :  { %322 = vsyncadd [#allocation4], 4294967040 }
 0x33b   :  { %248 = vsyncpa [#allocation3], 1 }
 0x33c   :  { %249 = vsyncpa [#allocation4], 1 }

</bundles_post_ra>
